<compile_context>
chip_gen: v7x
topology: tpu7x:2x2x1
jax: 0.10.0
libtpu: 0.0.40
codegen_flags: <defaults>
</compile_context>

<pallas_src>
import functools

import jax
import jax.numpy as jnp
from jax import lax
from jax.experimental import pallas as pl
from jax.experimental.pallas import tpu as pltpu


def _gru_fc_kernel(xp_ref,      # (Tc, Bc, 3H) f32: x @ W_i + folded biases, time-major
                   w_h_ref,     # (H, 3H)  bf16: [w_hr | w_hz | w_hn]
                   b_hn_ref,    # (1, H)   f32
                   w_fc_ref,    # (H, Cp)  bf16 (lane-padded FC weight)
                   b_fc_ref,    # (1, Cp)  f32
                   out_ref,     # (Bc, Cp) f32
                   h_ref,       # scratch (Bc, H) f32, carried across time chunks
                   *, seq_len, time_chunk, hidden, unroll):
    t_chunk = pl.program_id(1)

    @pl.when(t_chunk == 0)
    def _init():
        h_ref[...] = jnp.zeros_like(h_ref)

    Tc, Bc, _ = xp_ref.shape
    H = hidden

    # Hoisted out of the time loop (JAX does not CSE broadcasts).
    w_h = w_h_ref[...]                                    # bf16 (H, 3H)
    b_hn = jnp.broadcast_to(b_hn_ref[...], (Bc, H))       # (Bc, H) f32

    t_base = t_chunk * time_chunk
    needs_mask = (seq_len % time_chunk) != 0              # static (trace-time) flag

    def step(t, h):
        gi = xp_ref[t]                                    # (Bc, 3H) f32 (biases folded in)
        gh = jnp.dot(h.astype(jnp.bfloat16), w_h,
                     preferred_element_type=jnp.float32)  # one fused MXU matmul per step
        r = jax.nn.sigmoid(gi[:, 0:H] + gh[:, 0:H])
        z = jax.nn.sigmoid(gi[:, H:2 * H] + gh[:, H:2 * H])
        n = jnp.tanh(gi[:, 2 * H:] + r * (gh[:, 2 * H:] + b_hn))
        h_new = n + z * (h - n)                           # == (1-z)*n + z*h, one mul fewer
        if needs_mask:                                    # only traced if T was padded
            h_new = jnp.where(t_base + t < seq_len, h_new, h)
        return h_new

    h = lax.fori_loop(0, Tc, step, h_ref[...], unroll=unroll)
    h_ref[...] = h

    @pl.when(t_chunk == pl.num_programs(1) - 1)
    def _finalize():
        # Dropout (eval / rate=0.0) is identity. Fused FC, lane-dense output.
        out_ref[...] = (jnp.dot(h.astype(jnp.bfloat16), w_fc_ref[...],
                                preferred_element_type=jnp.float32)
                        + b_fc_ref[...])


def gru_model_forward(x, params, *, time_chunk=None, interpret=False):
    """x: (B, T, D) float32 (batch_first, like PyTorch). Returns (B, num_classes)."""
    x = x.astype(jnp.float32)
    B, T, D = x.shape
    w_ih = params["w_ih"].astype(jnp.float32)   # (3H, D)  gate order: r, z, n (PyTorch)
    w_hh = params["w_hh"].astype(jnp.float32)   # (3H, H)
    b_ih = params["b_ih"].astype(jnp.float32)   # (3H,)
    b_hh = params["b_hh"].astype(jnp.float32)   # (3H,)
    fc_w = params["fc_w"].astype(jnp.float32)   # (C, H)
    fc_b = params["fc_b"].astype(jnp.float32)   # (C,)
    H = w_hh.shape[1]
    C = fc_w.shape[0]
    G = 3 * H

    # ---- Input projection hoisted out of the recurrence: one big bf16 matmul. ----
    # gi[t] = x[t] @ [w_ir|w_iz|w_in]^T + [b_ir+b_hr | b_iz+b_hz | b_in]
    # (b_hn stays separate: PyTorch GRU multiplies it by r inside tanh.)
    w_i = w_ih.T                                                  # (D, 3H)
    gi_bias = jnp.concatenate([b_ih[0:H] + b_hh[0:H],
                               b_ih[H:2 * H] + b_hh[H:2 * H],
                               b_ih[2 * H:3 * H]])                # (3H,)
    x_tm = jnp.transpose(x, (1, 0, 2))                            # (T, B, D) time-major
    xp = jnp.dot(x_tm.reshape(T * B, D).astype(jnp.bfloat16),
                 w_i.astype(jnp.bfloat16),
                 preferred_element_type=jnp.float32).reshape(T, B, G) + gi_bias

    # ---- Time chunking: bound VMEM (v7x has 64 MiB) and overlap DMA/compute. ----
    if time_chunk is None:
        budget = 4 * 1024 * 1024          # double-buffered x_proj stream budget
        time_chunk = max(8, min(512, budget // (2 * B * G * 4)))
    Tc = int(min(time_chunk, T))
    n_t = -(-T // Tc)                     # ceil(T / Tc)
    T_pad = n_t * Tc
    if T_pad != T:
        xp = jnp.pad(xp, ((0, T_pad - T), (0, 0), (0, 0)))  # tail masked in kernel

    # ---- Fused hidden-state weights; lane-padded FC. ----
    w_h = w_hh.T.astype(jnp.bfloat16)                             # (H, 3H)
    b_hn = b_hh[2 * H:3 * H].reshape(1, H)
    Cp = max(128, -(-C // 128) * 128)                             # lane-dense output
    w_fc = jnp.zeros((H, Cp), jnp.bfloat16).at[:, :C].set(fc_w.T.astype(jnp.bfloat16))
    b_fc = jnp.zeros((1, Cp), jnp.float32).at[:, :C].set(fc_b)

    grid = (1, n_t)   # (batch tiles [parallel], time chunks [arbitrary, carried h])
    kernel = functools.partial(_gru_fc_kernel, seq_len=T, time_chunk=Tc,
                               hidden=H, unroll=min(8, Tc))

    out = pl.pallas_call(
        kernel,
        out_shape=jax.ShapeDtypeStruct((B, Cp), jnp.float32),
        grid_spec=pltpu.PrefetchScalarGridSpec(
            num_scalar_prefetch=0,
            grid=grid,
            in_specs=[
                pl.BlockSpec((Tc, B, G), lambda b, t: (t, b, 0)),  # streamed x_proj
                pl.BlockSpec((H, G), lambda b, t: (0, 0)),          # fused W_h (resident)
                pl.BlockSpec((1, H), lambda b, t: (0, 0)),
                pl.BlockSpec((H, Cp), lambda b, t: (0, 0)),
                pl.BlockSpec((1, Cp), lambda b, t: (0, 0)),
            ],
            out_specs=pl.BlockSpec((B, Cp), lambda b, t: (b, 0)),
            scratch_shapes=[pltpu.VMEM((B, H), jnp.float32)],       # hidden-state carry
        ),
        compiler_params=pltpu.CompilerParams(
            dimension_semantics=("parallel", "arbitrary"),
            vmem_limit_bytes=32 * 1024 * 1024,
        ),
        interpret=interpret,
    )(xp, w_h, b_hn, w_fc, b_fc)
    return out[:, :C]


def _reference_forward(x, params):
    """Pure-JAX f32 reference mirroring torch.nn.GRU (batch_first) + Linear."""
    w_ih, w_hh = params["w_ih"], params["w_hh"]
    b_ih, b_hh = params["b_ih"], params["b_hh"]
    fc_w, fc_b = params["fc_w"], params["fc_b"]
    H = w_hh.shape[1]
    B, T, D = x.shape

    def cell(h, x_t):
        gi = x_t @ w_ih.T + b_ih
        gh = h @ w_hh.T + b_hh
        i_r, i_z, i_n = gi[:, :H], gi[:, H:2 * H], gi[:, 2 * H:]
        h_r, h_z, h_n = gh[:, :H], gh[:, H:2 * H], gh[:, 2 * H:]
        r = jax.nn.sigmoid(i_r + h_r)
        z = jax.nn.sigmoid(i_z + h_z)
        n = jnp.tanh(i_n + r * h_n)
        return (1.0 - z) * n + z * h, None

    h0 = jnp.zeros((B, H), jnp.float32)
    h_last, _ = lax.scan(cell, h0, jnp.transpose(x, (1, 0, 2)))
    return h_last @ fc_w.T + fc_b


def init_params(key, input_size, hidden_size, num_classes):
    """Deterministic init matching PyTorch shapes (uniform +-1/sqrt(H))."""
    ks = jax.random.split(key, 6)
    s = 1.0 / jnp.sqrt(hidden_size)
    u = lambda k, shape: jax.random.uniform(k, shape, jnp.float32, -s, s)
    return {
        "w_ih": u(ks[0], (3 * hidden_size, input_size)),
        "w_hh": u(ks[1], (3 * hidden_size, hidden_size)),
        "b_ih": u(ks[2], (3 * hidden_size,)),
        "b_hh": u(ks[3], (3 * hidden_size,)),
        "fc_w": u(ks[4], (num_classes, hidden_size)),
        "fc_b": u(ks[5], (num_classes,)),
    }


if __name__ == "__main__":
    B, T, D, H, C = 2, 8, 4, 32, 1
    key = jax.random.PRNGKey(0)
    kx, kp = jax.random.split(key)
    x = jax.random.normal(kx, (B, T, D), jnp.float32)
    params = init_params(kp, input_size=D, hidden_size=H, num_classes=C)

    # bf16 matmul inputs (f32 accumulation) => compare to the f32 reference
    # with a correspondingly loosened tolerance.
    TOL = 5e-2

    # Single time chunk (T <= chunk).
    logits = gru_model_forward(x, params)
    jax.block_until_ready(logits)
    ref = _reference_forward(x, params)
    assert logits.shape == (B, C)
    assert jnp.allclose(logits, ref, atol=TOL, rtol=TOL), (logits, ref)

    # Multi-chunk path with a padded / masked tail (exercises the carried
    # hidden-state scratch across grid steps).
    T2 = 20
    x2 = jax.random.normal(jax.random.PRNGKey(1), (B, T2, D), jnp.float32)
    logits2 = gru_model_forward(x2, params, time_chunk=8)
    jax.block_until_ready(logits2)
    ref2 = _reference_forward(x2, params)
    assert logits2.shape == (B, C)
    assert jnp.allclose(logits2, ref2, atol=TOL, rtol=TOL), (logits2, ref2)

    print("KERNEL_OK")
</pallas_src>

<mosaic_0001>
module attributes {stable_mosaic.version = 11 : i64} {
  func.func @_gru_fc_kernel(%arg0: i32, %arg1: i32, %arg2: memref<8x2x96xf32, #tpu.memory_space<vmem>>, %arg3: memref<32x96xbf16, #tpu.memory_space<vmem>>, %arg4: memref<1x32xf32, #tpu.memory_space<vmem>>, %arg5: memref<32x128xbf16, #tpu.memory_space<vmem>>, %arg6: memref<1x128xf32, #tpu.memory_space<vmem>>, %arg7: memref<2x128xf32, #tpu.memory_space<vmem>>, %arg8: memref<2x32xf32, #tpu.memory_space<vmem>>) attributes {dimension_semantics = [#tpu.dimension_semantics<parallel>, #tpu.dimension_semantics<arbitrary>], iteration_bounds = array<i64: 1, 1>, scalar_prefetch = 0 : i64, scratch_operands = 1 : i64, tpu.core_type = #tpu.core_type<tc>, window_params = [{transform_indices = @transform_0, window_bounds = array<i64: 8, 2, 96>}, {pipeline_mode = #tpu.pipeline_mode<synchronous>, transform_indices = @transform_1, window_bounds = array<i64: 32, 96>}, {pipeline_mode = #tpu.pipeline_mode<synchronous>, transform_indices = @transform_2, window_bounds = array<i64: 1, 32>}, {pipeline_mode = #tpu.pipeline_mode<synchronous>, transform_indices = @transform_3, window_bounds = array<i64: 32, 128>}, {pipeline_mode = #tpu.pipeline_mode<synchronous>, transform_indices = @transform_4, window_bounds = array<i64: 1, 128>}, {transform_indices = @transform_5, window_bounds = array<i64: 2, 128>}]} {
    %c0_i32 = arith.constant 0 : i32
    %0 = arith.cmpi eq, %arg1, %c0_i32 : i32
    %1 = arith.extui %0 : i1 to i32
    %c0_i32_0 = arith.constant 0 : i32
    %2 = arith.cmpi ne, %1, %c0_i32_0 : i32
    scf.if %2 {
      %cst_50 = arith.constant 0.000000e+00 : f32
      %252 = vector.broadcast %cst_50 : f32 to vector<2x32xf32>
      %c0_51 = arith.constant 0 : index
      %c0_52 = arith.constant 0 : index
      %253 = vector.load %arg8[%c0_51, %c0_52] : memref<2x32xf32, #tpu.memory_space<vmem>>, vector<2x32xf32>
      tpu.vector_store %arg8[%c0_51, %c0_52], %252 {strides = array<i32>} : memref<2x32xf32, #tpu.memory_space<vmem>>, vector<2x32xf32>,
    } else {
    }
    %c0 = arith.constant 0 : index
    %c0_1 = arith.constant 0 : index
    %3 = vector.load %arg3[%c0, %c0_1] : memref<32x96xbf16, #tpu.memory_space<vmem>>, vector<32x96xbf16>
    %c0_2 = arith.constant 0 : index
    %c0_3 = arith.constant 0 : index
    %4 = vector.load %arg4[%c0_2, %c0_3] : memref<1x32xf32, #tpu.memory_space<vmem>>, vector<1x32xf32>
    %5 = vector.shape_cast %4 : vector<1x32xf32> to vector<1x32xf32>
    %6 = vector.broadcast %5 : vector<1x32xf32> to vector<2x32xf32>
    %c0_4 = arith.constant 0 : index
    %c0_5 = arith.constant 0 : index
    %7 = vector.load %arg8[%c0_4, %c0_5] : memref<2x32xf32, #tpu.memory_space<vmem>>, vector<2x32xf32>
    %c0_i32_6 = arith.constant 0 : i32
    %8 = arith.index_cast %c0_i32_6 : i32 to index
    %c0_7 = arith.constant 0 : index
    %c0_8 = arith.constant 0 : index
    %9 = vector.load %arg2[%8, %c0_7, %c0_8] : memref<8x2x96xf32, #tpu.memory_space<vmem>>, vector<1x2x96xf32>
    %10 = vector.shape_cast %9 : vector<1x2x96xf32> to vector<2x96xf32>
    %11 = arith.truncf %7 : vector<2x32xf32> to vector<2x32xbf16>
    %cst = arith.constant dense<0.000000e+00> : vector<2x96xf32>
    %12 = tpu.matmul %11, %3, %cst {dimension_numbers = #tpu.dot_dimension_numbers<[1], [0], [0], [1], [0, 0, 1, 1], [], []>} : vector<2x32xbf16>, vector<32x96xbf16>, vector<2x96xf32> -> vector<2x96xf32>
    %13 = vector.extract_strided_slice %10 {offsets = [0, 0], sizes = [2, 32], strides = [1, 1]} : vector<2x96xf32> to vector<2x32xf32>
    %14 = vector.extract_strided_slice %12 {offsets = [0, 0], sizes = [2, 32], strides = [1, 1]} : vector<2x96xf32> to vector<2x32xf32>
    %15 = arith.addf %13, %14 : vector<2x32xf32>
    %16 = arith.negf %15 : vector<2x32xf32>
    %17 = math.exp %16 : vector<2x32xf32>
    %cst_9 = arith.constant 1.000000e+00 : f32
    %18 = vector.broadcast %cst_9 : f32 to vector<2x32xf32>
    %19 = arith.addf %18, %17 : vector<2x32xf32>
    %20 = arith.divf %18, %19 : vector<2x32xf32>
    %21 = vector.extract_strided_slice %10 {offsets = [0, 32], sizes = [2, 32], strides = [1, 1]} : vector<2x96xf32> to vector<2x32xf32>
    %22 = vector.extract_strided_slice %12 {offsets = [0, 32], sizes = [2, 32], strides = [1, 1]} : vector<2x96xf32> to vector<2x32xf32>
    %23 = arith.addf %21, %22 : vector<2x32xf32>
    %24 = arith.negf %23 : vector<2x32xf32>
    %25 = math.exp %24 : vector<2x32xf32>
    %cst_10 = arith.constant 1.000000e+00 : f32
    %26 = vector.broadcast %cst_10 : f32 to vector<2x32xf32>
    %27 = arith.addf %26, %25 : vector<2x32xf32>
    %28 = arith.divf %26, %27 : vector<2x32xf32>
    %29 = vector.extract_strided_slice %10 {offsets = [0, 64], sizes = [2, 32], strides = [1, 1]} : vector<2x96xf32> to vector<2x32xf32>
    %30 = vector.extract_strided_slice %12 {offsets = [0, 64], sizes = [2, 32], strides = [1, 1]} : vector<2x96xf32> to vector<2x32xf32>
    %31 = arith.addf %30, %6 : vector<2x32xf32>
    %32 = arith.mulf %20, %31 : vector<2x32xf32>
    %33 = arith.addf %29, %32 : vector<2x32xf32>
    %34 = math.tanh %33 : vector<2x32xf32>
    %35 = arith.subf %7, %34 : vector<2x32xf32>
    %36 = arith.mulf %28, %35 : vector<2x32xf32>
    %37 = arith.addf %34, %36 : vector<2x32xf32>
    %c1_i32 = arith.constant 1 : i32
    %38 = arith.index_cast %c1_i32 : i32 to index
    %c0_11 = arith.constant 0 : index
    %c0_12 = arith.constant 0 : index
    %39 = vector.load %arg2[%38, %c0_11, %c0_12] : memref<8x2x96xf32, #tpu.memory_space<vmem>>, vector<1x2x96xf32>
    %40 = vector.shape_cast %39 : vector<1x2x96xf32> to vector<2x96xf32>
    %41 = arith.truncf %37 : vector<2x32xf32> to vector<2x32xbf16>
    %cst_13 = arith.constant dense<0.000000e+00> : vector<2x96xf32>
    %42 = tpu.matmul %41, %3, %cst_13 {dimension_numbers = #tpu.dot_dimension_numbers<[1], [0], [0], [1], [0, 0, 1, 1], [], []>} : vector<2x32xbf16>, vector<32x96xbf16>, vector<2x96xf32> -> vector<2x96xf32>
    %43 = vector.extract_strided_slice %40 {offsets = [0, 0], sizes = [2, 32], strides = [1, 1]} : vector<2x96xf32> to vector<2x32xf32>
    %44 = vector.extract_strided_slice %42 {offsets = [0, 0], sizes = [2, 32], strides = [1, 1]} : vector<2x96xf32> to vector<2x32xf32>
    %45 = arith.addf %43, %44 : vector<2x32xf32>
    %46 = arith.negf %45 : vector<2x32xf32>
    %47 = math.exp %46 : vector<2x32xf32>
    %cst_14 = arith.constant 1.000000e+00 : f32
    %48 = vector.broadcast %cst_14 : f32 to vector<2x32xf32>
    %49 = arith.addf %48, %47 : vector<2x32xf32>
    %50 = arith.divf %48, %49 : vector<2x32xf32>
    %51 = vector.extract_strided_slice %40 {offsets = [0, 32], sizes = [2, 32], strides = [1, 1]} : vector<2x96xf32> to vector<2x32xf32>
    %52 = vector.extract_strided_slice %42 {offsets = [0, 32], sizes = [2, 32], strides = [1, 1]} : vector<2x96xf32> to vector<2x32xf32>
    %53 = arith.addf %51, %52 : vector<2x32xf32>
    %54 = arith.negf %53 : vector<2x32xf32>
    %55 = math.exp %54 : vector<2x32xf32>
    %cst_15 = arith.constant 1.000000e+00 : f32
    %56 = vector.broadcast %cst_15 : f32 to vector<2x32xf32>
    %57 = arith.addf %56, %55 : vector<2x32xf32>
    %58 = arith.divf %56, %57 : vector<2x32xf32>
    %59 = vector.extract_strided_slice %40 {offsets = [0, 64], sizes = [2, 32], strides = [1, 1]} : vector<2x96xf32> to vector<2x32xf32>
    %60 = vector.extract_strided_slice %42 {offsets = [0, 64], sizes = [2, 32], strides = [1, 1]} : vector<2x96xf32> to vector<2x32xf32>
    %61 = arith.addf %60, %6 : vector<2x32xf32>
    %62 = arith.mulf %50, %61 : vector<2x32xf32>
    %63 = arith.addf %59, %62 : vector<2x32xf32>
    %64 = math.tanh %63 : vector<2x32xf32>
    %65 = arith.subf %37, %64 : vector<2x32xf32>
    %66 = arith.mulf %58, %65 : vector<2x32xf32>
    %67 = arith.addf %64, %66 : vector<2x32xf32>
    %c2_i32 = arith.constant 2 : i32
    %68 = arith.index_cast %c2_i32 : i32 to index
    %c0_16 = arith.constant 0 : index
    %c0_17 = arith.constant 0 : index
    %69 = vector.load %arg2[%68, %c0_16, %c0_17] : memref<8x2x96xf32, #tpu.memory_space<vmem>>, vector<1x2x96xf32>
    %70 = vector.shape_cast %69 : vector<1x2x96xf32> to vector<2x96xf32>
    %71 = arith.truncf %67 : vector<2x32xf32> to vector<2x32xbf16>
    %cst_18 = arith.constant dense<0.000000e+00> : vector<2x96xf32>
    %72 = tpu.matmul %71, %3, %cst_18 {dimension_numbers = #tpu.dot_dimension_numbers<[1], [0], [0], [1], [0, 0, 1, 1], [], []>} : vector<2x32xbf16>, vector<32x96xbf16>, vector<2x96xf32> -> vector<2x96xf32>
    %73 = vector.extract_strided_slice %70 {offsets = [0, 0], sizes = [2, 32], strides = [1, 1]} : vector<2x96xf32> to vector<2x32xf32>
    %74 = vector.extract_strided_slice %72 {offsets = [0, 0], sizes = [2, 32], strides = [1, 1]} : vector<2x96xf32> to vector<2x32xf32>
    %75 = arith.addf %73, %74 : vector<2x32xf32>
    %76 = arith.negf %75 : vector<2x32xf32>
    %77 = math.exp %76 : vector<2x32xf32>
    %cst_19 = arith.constant 1.000000e+00 : f32
    %78 = vector.broadcast %cst_19 : f32 to vector<2x32xf32>
    %79 = arith.addf %78, %77 : vector<2x32xf32>
    %80 = arith.divf %78, %79 : vector<2x32xf32>
    %81 = vector.extract_strided_slice %70 {offsets = [0, 32], sizes = [2, 32], strides = [1, 1]} : vector<2x96xf32> to vector<2x32xf32>
    %82 = vector.extract_strided_slice %72 {offsets = [0, 32], sizes = [2, 32], strides = [1, 1]} : vector<2x96xf32> to vector<2x32xf32>
    %83 = arith.addf %81, %82 : vector<2x32xf32>
    %84 = arith.negf %83 : vector<2x32xf32>
    %85 = math.exp %84 : vector<2x32xf32>
    %cst_20 = arith.constant 1.000000e+00 : f32
    %86 = vector.broadcast %cst_20 : f32 to vector<2x32xf32>
    %87 = arith.addf %86, %85 : vector<2x32xf32>
    %88 = arith.divf %86, %87 : vector<2x32xf32>
    %89 = vector.extract_strided_slice %70 {offsets = [0, 64], sizes = [2, 32], strides = [1, 1]} : vector<2x96xf32> to vector<2x32xf32>
    %90 = vector.extract_strided_slice %72 {offsets = [0, 64], sizes = [2, 32], strides = [1, 1]} : vector<2x96xf32> to vector<2x32xf32>
    %91 = arith.addf %90, %6 : vector<2x32xf32>
    %92 = arith.mulf %80, %91 : vector<2x32xf32>
    %93 = arith.addf %89, %92 : vector<2x32xf32>
    %94 = math.tanh %93 : vector<2x32xf32>
    %95 = arith.subf %67, %94 : vector<2x32xf32>
    %96 = arith.mulf %88, %95 : vector<2x32xf32>
    %97 = arith.addf %94, %96 : vector<2x32xf32>
    %c3_i32 = arith.constant 3 : i32
    %98 = arith.index_cast %c3_i32 : i32 to index
    %c0_21 = arith.constant 0 : index
    %c0_22 = arith.constant 0 : index
    %99 = vector.load %arg2[%98, %c0_21, %c0_22] : memref<8x2x96xf32, #tpu.memory_space<vmem>>, vector<1x2x96xf32>
    %100 = vector.shape_cast %99 : vector<1x2x96xf32> to vector<2x96xf32>
    %101 = arith.truncf %97 : vector<2x32xf32> to vector<2x32xbf16>
    %cst_23 = arith.constant dense<0.000000e+00> : vector<2x96xf32>
    %102 = tpu.matmul %101, %3, %cst_23 {dimension_numbers = #tpu.dot_dimension_numbers<[1], [0], [0], [1], [0, 0, 1, 1], [], []>} : vector<2x32xbf16>, vector<32x96xbf16>, vector<2x96xf32> -> vector<2x96xf32>
    %103 = vector.extract_strided_slice %100 {offsets = [0, 0], sizes = [2, 32], strides = [1, 1]} : vector<2x96xf32> to vector<2x32xf32>
    %104 = vector.extract_strided_slice %102 {offsets = [0, 0], sizes = [2, 32], strides = [1, 1]} : vector<2x96xf32> to vector<2x32xf32>
    %105 = arith.addf %103, %104 : vector<2x32xf32>
    %106 = arith.negf %105 : vector<2x32xf32>
    %107 = math.exp %106 : vector<2x32xf32>
    %cst_24 = arith.constant 1.000000e+00 : f32
    %108 = vector.broadcast %cst_24 : f32 to vector<2x32xf32>
    %109 = arith.addf %108, %107 : vector<2x32xf32>
    %110 = arith.divf %108, %109 : vector<2x32xf32>
    %111 = vector.extract_strided_slice %100 {offsets = [0, 32], sizes = [2, 32], strides = [1, 1]} : vector<2x96xf32> to vector<2x32xf32>
    %112 = vector.extract_strided_slice %102 {offsets = [0, 32], sizes = [2, 32], strides = [1, 1]} : vector<2x96xf32> to vector<2x32xf32>
    %113 = arith.addf %111, %112 : vector<2x32xf32>
    %114 = arith.negf %113 : vector<2x32xf32>
    %115 = math.exp %114 : vector<2x32xf32>
    %cst_25 = arith.constant 1.000000e+00 : f32
    %116 = vector.broadcast %cst_25 : f32 to vector<2x32xf32>
    %117 = arith.addf %116, %115 : vector<2x32xf32>
    %118 = arith.divf %116, %117 : vector<2x32xf32>
    %119 = vector.extract_strided_slice %100 {offsets = [0, 64], sizes = [2, 32], strides = [1, 1]} : vector<2x96xf32> to vector<2x32xf32>
    %120 = vector.extract_strided_slice %102 {offsets = [0, 64], sizes = [2, 32], strides = [1, 1]} : vector<2x96xf32> to vector<2x32xf32>
    %121 = arith.addf %120, %6 : vector<2x32xf32>
    %122 = arith.mulf %110, %121 : vector<2x32xf32>
    %123 = arith.addf %119, %122 : vector<2x32xf32>
    %124 = math.tanh %123 : vector<2x32xf32>
    %125 = arith.subf %97, %124 : vector<2x32xf32>
    %126 = arith.mulf %118, %125 : vector<2x32xf32>
    %127 = arith.addf %124, %126 : vector<2x32xf32>
    %c4_i32 = arith.constant 4 : i32
    %128 = arith.index_cast %c4_i32 : i32 to index
    %c0_26 = arith.constant 0 : index
    %c0_27 = arith.constant 0 : index
    %129 = vector.load %arg2[%128, %c0_26, %c0_27] : memref<8x2x96xf32, #tpu.memory_space<vmem>>, vector<1x2x96xf32>
    %130 = vector.shape_cast %129 : vector<1x2x96xf32> to vector<2x96xf32>
    %131 = arith.truncf %127 : vector<2x32xf32> to vector<2x32xbf16>
    %cst_28 = arith.constant dense<0.000000e+00> : vector<2x96xf32>
    %132 = tpu.matmul %131, %3, %cst_28 {dimension_numbers = #tpu.dot_dimension_numbers<[1], [0], [0], [1], [0, 0, 1, 1], [], []>} : vector<2x32xbf16>, vector<32x96xbf16>, vector<2x96xf32> -> vector<2x96xf32>
    %133 = vector.extract_strided_slice %130 {offsets = [0, 0], sizes = [2, 32], strides = [1, 1]} : vector<2x96xf32> to vector<2x32xf32>
    %134 = vector.extract_strided_slice %132 {offsets = [0, 0], sizes = [2, 32], strides = [1, 1]} : vector<2x96xf32> to vector<2x32xf32>
    %135 = arith.addf %133, %134 : vector<2x32xf32>
    %136 = arith.negf %135 : vector<2x32xf32>
    %137 = math.exp %136 : vector<2x32xf32>
    %cst_29 = arith.constant 1.000000e+00 : f32
    %138 = vector.broadcast %cst_29 : f32 to vector<2x32xf32>
    %139 = arith.addf %138, %137 : vector<2x32xf32>
    %140 = arith.divf %138, %139 : vector<2x32xf32>
    %141 = vector.extract_strided_slice %130 {offsets = [0, 32], sizes = [2, 32], strides = [1, 1]} : vector<2x96xf32> to vector<2x32xf32>
    %142 = vector.extract_strided_slice %132 {offsets = [0, 32], sizes = [2, 32], strides = [1, 1]} : vector<2x96xf32> to vector<2x32xf32>
    %143 = arith.addf %141, %142 : vector<2x32xf32>
    %144 = arith.negf %143 : vector<2x32xf32>
    %145 = math.exp %144 : vector<2x32xf32>
    %cst_30 = arith.constant 1.000000e+00 : f32
    %146 = vector.broadcast %cst_30 : f32 to vector<2x32xf32>
    %147 = arith.addf %146, %145 : vector<2x32xf32>
    %148 = arith.divf %146, %147 : vector<2x32xf32>
    %149 = vector.extract_strided_slice %130 {offsets = [0, 64], sizes = [2, 32], strides = [1, 1]} : vector<2x96xf32> to vector<2x32xf32>
    %150 = vector.extract_strided_slice %132 {offsets = [0, 64], sizes = [2, 32], strides = [1, 1]} : vector<2x96xf32> to vector<2x32xf32>
    %151 = arith.addf %150, %6 : vector<2x32xf32>
    %152 = arith.mulf %140, %151 : vector<2x32xf32>
    %153 = arith.addf %149, %152 : vector<2x32xf32>
    %154 = math.tanh %153 : vector<2x32xf32>
    %155 = arith.subf %127, %154 : vector<2x32xf32>
    %156 = arith.mulf %148, %155 : vector<2x32xf32>
    %157 = arith.addf %154, %156 : vector<2x32xf32>
    %c5_i32 = arith.constant 5 : i32
    %158 = arith.index_cast %c5_i32 : i32 to index
    %c0_31 = arith.constant 0 : index
    %c0_32 = arith.constant 0 : index
    %159 = vector.load %arg2[%158, %c0_31, %c0_32] : memref<8x2x96xf32, #tpu.memory_space<vmem>>, vector<1x2x96xf32>
    %160 = vector.shape_cast %159 : vector<1x2x96xf32> to vector<2x96xf32>
    %161 = arith.truncf %157 : vector<2x32xf32> to vector<2x32xbf16>
    %cst_33 = arith.constant dense<0.000000e+00> : vector<2x96xf32>
    %162 = tpu.matmul %161, %3, %cst_33 {dimension_numbers = #tpu.dot_dimension_numbers<[1], [0], [0], [1], [0, 0, 1, 1], [], []>} : vector<2x32xbf16>, vector<32x96xbf16>, vector<2x96xf32> -> vector<2x96xf32>
    %163 = vector.extract_strided_slice %160 {offsets = [0, 0], sizes = [2, 32], strides = [1, 1]} : vector<2x96xf32> to vector<2x32xf32>
    %164 = vector.extract_strided_slice %162 {offsets = [0, 0], sizes = [2, 32], strides = [1, 1]} : vector<2x96xf32> to vector<2x32xf32>
    %165 = arith.addf %163, %164 : vector<2x32xf32>
    %166 = arith.negf %165 : vector<2x32xf32>
    %167 = math.exp %166 : vector<2x32xf32>
    %cst_34 = arith.constant 1.000000e+00 : f32
    %168 = vector.broadcast %cst_34 : f32 to vector<2x32xf32>
    %169 = arith.addf %168, %167 : vector<2x32xf32>
    %170 = arith.divf %168, %169 : vector<2x32xf32>
    %171 = vector.extract_strided_slice %160 {offsets = [0, 32], sizes = [2, 32], strides = [1, 1]} : vector<2x96xf32> to vector<2x32xf32>
    %172 = vector.extract_strided_slice %162 {offsets = [0, 32], sizes = [2, 32], strides = [1, 1]} : vector<2x96xf32> to vector<2x32xf32>
    %173 = arith.addf %171, %172 : vector<2x32xf32>
    %174 = arith.negf %173 : vector<2x32xf32>
    %175 = math.exp %174 : vector<2x32xf32>
    %cst_35 = arith.constant 1.000000e+00 : f32
    %176 = vector.broadcast %cst_35 : f32 to vector<2x32xf32>
    %177 = arith.addf %176, %175 : vector<2x32xf32>
    %178 = arith.divf %176, %177 : vector<2x32xf32>
    %179 = vector.extract_strided_slice %160 {offsets = [0, 64], sizes = [2, 32], strides = [1, 1]} : vector<2x96xf32> to vector<2x32xf32>
    %180 = vector.extract_strided_slice %162 {offsets = [0, 64], sizes = [2, 32], strides = [1, 1]} : vector<2x96xf32> to vector<2x32xf32>
    %181 = arith.addf %180, %6 : vector<2x32xf32>
    %182 = arith.mulf %170, %181 : vector<2x32xf32>
    %183 = arith.addf %179, %182 : vector<2x32xf32>
    %184 = math.tanh %183 : vector<2x32xf32>
    %185 = arith.subf %157, %184 : vector<2x32xf32>
    %186 = arith.mulf %178, %185 : vector<2x32xf32>
    %187 = arith.addf %184, %186 : vector<2x32xf32>
    %c6_i32 = arith.constant 6 : i32
    %188 = arith.index_cast %c6_i32 : i32 to index
    %c0_36 = arith.constant 0 : index
    %c0_37 = arith.constant 0 : index
    %189 = vector.load %arg2[%188, %c0_36, %c0_37] : memref<8x2x96xf32, #tpu.memory_space<vmem>>, vector<1x2x96xf32>
    %190 = vector.shape_cast %189 : vector<1x2x96xf32> to vector<2x96xf32>
    %191 = arith.truncf %187 : vector<2x32xf32> to vector<2x32xbf16>
    %cst_38 = arith.constant dense<0.000000e+00> : vector<2x96xf32>
    %192 = tpu.matmul %191, %3, %cst_38 {dimension_numbers = #tpu.dot_dimension_numbers<[1], [0], [0], [1], [0, 0, 1, 1], [], []>} : vector<2x32xbf16>, vector<32x96xbf16>, vector<2x96xf32> -> vector<2x96xf32>
    %193 = vector.extract_strided_slice %190 {offsets = [0, 0], sizes = [2, 32], strides = [1, 1]} : vector<2x96xf32> to vector<2x32xf32>
    %194 = vector.extract_strided_slice %192 {offsets = [0, 0], sizes = [2, 32], strides = [1, 1]} : vector<2x96xf32> to vector<2x32xf32>
    %195 = arith.addf %193, %194 : vector<2x32xf32>
    %196 = arith.negf %195 : vector<2x32xf32>
    %197 = math.exp %196 : vector<2x32xf32>
    %cst_39 = arith.constant 1.000000e+00 : f32
    %198 = vector.broadcast %cst_39 : f32 to vector<2x32xf32>
    %199 = arith.addf %198, %197 : vector<2x32xf32>
    %200 = arith.divf %198, %199 : vector<2x32xf32>
    %201 = vector.extract_strided_slice %190 {offsets = [0, 32], sizes = [2, 32], strides = [1, 1]} : vector<2x96xf32> to vector<2x32xf32>
    %202 = vector.extract_strided_slice %192 {offsets = [0, 32], sizes = [2, 32], strides = [1, 1]} : vector<2x96xf32> to vector<2x32xf32>
    %203 = arith.addf %201, %202 : vector<2x32xf32>
    %204 = arith.negf %203 : vector<2x32xf32>
    %205 = math.exp %204 : vector<2x32xf32>
    %cst_40 = arith.constant 1.000000e+00 : f32
    %206 = vector.broadcast %cst_40 : f32 to vector<2x32xf32>
    %207 = arith.addf %206, %205 : vector<2x32xf32>
    %208 = arith.divf %206, %207 : vector<2x32xf32>
    %209 = vector.extract_strided_slice %190 {offsets = [0, 64], sizes = [2, 32], strides = [1, 1]} : vector<2x96xf32> to vector<2x32xf32>
    %210 = vector.extract_strided_slice %192 {offsets = [0, 64], sizes = [2, 32], strides = [1, 1]} : vector<2x96xf32> to vector<2x32xf32>
    %211 = arith.addf %210, %6 : vector<2x32xf32>
    %212 = arith.mulf %200, %211 : vector<2x32xf32>
    %213 = arith.addf %209, %212 : vector<2x32xf32>
    %214 = math.tanh %213 : vector<2x32xf32>
    %215 = arith.subf %187, %214 : vector<2x32xf32>
    %216 = arith.mulf %208, %215 : vector<2x32xf32>
    %217 = arith.addf %214, %216 : vector<2x32xf32>
    %c7_i32 = arith.constant 7 : i32
    %218 = arith.index_cast %c7_i32 : i32 to index
    %c0_41 = arith.constant 0 : index
    %c0_42 = arith.constant 0 : index
    %219 = vector.load %arg2[%218, %c0_41, %c0_42] : memref<8x2x96xf32, #tpu.memory_space<vmem>>, vector<1x2x96xf32>
    %220 = vector.shape_cast %219 : vector<1x2x96xf32> to vector<2x96xf32>
    %221 = arith.truncf %217 : vector<2x32xf32> to vector<2x32xbf16>
    %cst_43 = arith.constant dense<0.000000e+00> : vector<2x96xf32>
    %222 = tpu.matmul %221, %3, %cst_43 {dimension_numbers = #tpu.dot_dimension_numbers<[1], [0], [0], [1], [0, 0, 1, 1], [], []>} : vector<2x32xbf16>, vector<32x96xbf16>, vector<2x96xf32> -> vector<2x96xf32>
    %223 = vector.extract_strided_slice %220 {offsets = [0, 0], sizes = [2, 32], strides = [1, 1]} : vector<2x96xf32> to vector<2x32xf32>
    %224 = vector.extract_strided_slice %222 {offsets = [0, 0], sizes = [2, 32], strides = [1, 1]} : vector<2x96xf32> to vector<2x32xf32>
    %225 = arith.addf %223, %224 : vector<2x32xf32>
    %226 = arith.negf %225 : vector<2x32xf32>
    %227 = math.exp %226 : vector<2x32xf32>
    %cst_44 = arith.constant 1.000000e+00 : f32
    %228 = vector.broadcast %cst_44 : f32 to vector<2x32xf32>
    %229 = arith.addf %228, %227 : vector<2x32xf32>
    %230 = arith.divf %228, %229 : vector<2x32xf32>
    %231 = vector.extract_strided_slice %220 {offsets = [0, 32], sizes = [2, 32], strides = [1, 1]} : vector<2x96xf32> to vector<2x32xf32>
    %232 = vector.extract_strided_slice %222 {offsets = [0, 32], sizes = [2, 32], strides = [1, 1]} : vector<2x96xf32> to vector<2x32xf32>
    %233 = arith.addf %231, %232 : vector<2x32xf32>
    %234 = arith.negf %233 : vector<2x32xf32>
    %235 = math.exp %234 : vector<2x32xf32>
    %cst_45 = arith.constant 1.000000e+00 : f32
    %236 = vector.broadcast %cst_45 : f32 to vector<2x32xf32>
    %237 = arith.addf %236, %235 : vector<2x32xf32>
    %238 = arith.divf %236, %237 : vector<2x32xf32>
    %239 = vector.extract_strided_slice %220 {offsets = [0, 64], sizes = [2, 32], strides = [1, 1]} : vector<2x96xf32> to vector<2x32xf32>
    %240 = vector.extract_strided_slice %222 {offsets = [0, 64], sizes = [2, 32], strides = [1, 1]} : vector<2x96xf32> to vector<2x32xf32>
    %241 = arith.addf %240, %6 : vector<2x32xf32>
    %242 = arith.mulf %230, %241 : vector<2x32xf32>
    %243 = arith.addf %239, %242 : vector<2x32xf32>
    %244 = math.tanh %243 : vector<2x32xf32>
    %245 = arith.subf %217, %244 : vector<2x32xf32>
    %246 = arith.mulf %238, %245 : vector<2x32xf32>
    %247 = arith.addf %244, %246 : vector<2x32xf32>
    %c8_i32 = arith.constant 8 : i32
    %c0_46 = arith.constant 0 : index
    %c0_47 = arith.constant 0 : index
    %248 = vector.load %arg8[%c0_46, %c0_47] : memref<2x32xf32, #tpu.memory_space<vmem>>, vector<2x32xf32>
    tpu.vector_store %arg8[%c0_46, %c0_47], %247 {strides = array<i32>} : memref<2x32xf32, #tpu.memory_space<vmem>>, vector<2x32xf32>,
    %c0_i32_48 = arith.constant 0 : i32
    %249 = arith.cmpi eq, %arg1, %c0_i32_48 : i32
    %250 = arith.extui %249 : i1 to i32
    %c0_i32_49 = arith.constant 0 : i32
    %251 = arith.cmpi ne, %250, %c0_i32_49 : i32
    scf.if %251 {
      %252 = arith.truncf %247 : vector<2x32xf32> to vector<2x32xbf16>
      %c0_50 = arith.constant 0 : index
      %c0_51 = arith.constant 0 : index
      %253 = vector.load %arg5[%c0_50, %c0_51] : memref<32x128xbf16, #tpu.memory_space<vmem>>, vector<32x128xbf16>
      %cst_52 = arith.constant dense<0.000000e+00> : vector<2x128xf32>
      %254 = tpu.matmul %252, %253, %cst_52 {dimension_numbers = #tpu.dot_dimension_numbers<[1], [0], [0], [1], [0, 0, 1, 1], [], []>} : vector<2x32xbf16>, vector<32x128xbf16>, vector<2x128xf32> -> vector<2x128xf32>
      %c0_53 = arith.constant 0 : index
      %c0_54 = arith.constant 0 : index
      %255 = vector.load %arg6[%c0_53, %c0_54] : memref<1x128xf32, #tpu.memory_space<vmem>>, vector<1x128xf32>
      %256 = vector.broadcast %255 : vector<1x128xf32> to vector<2x128xf32>
      %257 = arith.addf %254, %256 : vector<2x128xf32>
      %c0_55 = arith.constant 0 : index
      %c0_56 = arith.constant 0 : index
      %258 = vector.load %arg7[%c0_55, %c0_56] : memref<2x128xf32, #tpu.memory_space<vmem>>, vector<2x128xf32>
      tpu.vector_store %arg7[%c0_55, %c0_56], %257 {strides = array<i32>} : memref<2x128xf32, #tpu.memory_space<vmem>>, vector<2x128xf32>,
    } else {
    }
    return
  }
  func.func @transform_0(%arg0: i32, %arg1: i32) -> (i32, i32, i32) {
    %c0_i32 = arith.constant 0 : i32
    %c0_i32_0 = arith.constant 0 : i32
    return %arg1, %arg0, %c0_i32 : i32, i32, i32
  }
  func.func @transform_1(%arg0: i32, %arg1: i32) -> (i32, i32) {
    %c0_i32 = arith.constant 0 : i32
    %c0_i32_0 = arith.constant 0 : i32
    %c0_i32_1 = arith.constant 0 : i32
    return %c0_i32, %c0_i32_0 : i32, i32
  }
  func.func @transform_2(%arg0: i32, %arg1: i32) -> (i32, i32) {
    %c0_i32 = arith.constant 0 : i32
    %c0_i32_0 = arith.constant 0 : i32
    %c0_i32_1 = arith.constant 0 : i32
    return %c0_i32, %c0_i32_0 : i32, i32
  }
  func.func @transform_3(%arg0: i32, %arg1: i32) -> (i32, i32) {
    %c0_i32 = arith.constant 0 : i32
    %c0_i32_0 = arith.constant 0 : i32
    %c0_i32_1 = arith.constant 0 : i32
    return %c0_i32, %c0_i32_0 : i32, i32
  }
  func.func @transform_4(%arg0: i32, %arg1: i32) -> (i32, i32) {
    %c0_i32 = arith.constant 0 : i32
    %c0_i32_0 = arith.constant 0 : i32
    %c0_i32_1 = arith.constant 0 : i32
    return %c0_i32, %c0_i32_0 : i32, i32
  }
  func.func @transform_5(%arg0: i32, %arg1: i32) -> (i32, i32) {
    %c0_i32 = arith.constant 0 : i32
    %c0_i32_0 = arith.constant 0 : i32
    return %arg0, %c0_i32 : i32, i32
  }
}

</mosaic_0001>

<bundles_post_ra>
// kernel: tpu_custom_call.1
= control target key start
LH: loop header
LB: loop body
LE: loop exit
PB: predicated region body
PF: predicated region fallthrough
CT: control target
= control target key end

     0   :  { %10 = vsyncpa [#allocation4], 0  ;;  %s1327_s0 = inlined_call_operand.hbm [shape: f32[8,2,96], index: 0, kind: input, shape index: {}]   ;;  %s1328_s1 = inlined_call_operand.hbm [shape: bf16[32,96], index: 1, kind: input, shape index: {}]   ;;  %s1329_s2 = inlined_call_operand.vmem [shape: f32[1,32], index: 2, kind: input, shape index: {}]   ;;  %s1330_s3 = inlined_call_operand.hbm [shape: bf16[32,128], index: 3, kind: input, shape index: {}]   ;;  %s1331_s4 = inlined_call_operand.vmem [shape: f32[1,128], index: 4, kind: input, shape index: {}]   ;;  %s1332_s5 = inlined_call_operand.hbm [shape: f32[2,128], index: 5, kind: output, shape index: {}]  }
   0x1   :  { %11 = vsyncpa [#allocation7], 0 }
   0x2   :  { %12 = vsyncpa [#allocation5], 0  ;;  %s1103_s18 = smov [#allocation6]   ;;  %s1009_s22 = scalar_lea.hbm %s1328_s1, 256 }
   0x3   :  { %s30_s19 = sshll.u32 %s1103_s18, 4  ;;  %p1010_p0 = scmp.ne.s32.totalorder %s1328_s1, %s1009_s22  ;;  %s31_s19 = int_to_ptr.vmem [resolvable:$true] %s30_s19 }
   0x4   :  { %p1013_p1 = scmp.lt.u32.totalorder %s1009_s22, %s1328_s1 }
   0x6   :  { %p1015_p2 = pnand %p1013_p1, %p1010_p0 }
   0x8   :  { %1018 = shalt.err (!%p1015_p2)
}
   0x9   :  { %s1019_s27 = scalar_lea.vmem %s31_s19, 256  ;;  %p1024_p4 = scmp.lt.s32.totalorder %s31_s19, %s31_s19 }
   0xa   :  { %p1020_p3 = scmp.ne.s32.totalorder %s31_s19, %s1019_s27  ;;  %p1025_p5 = scmp.lt.s32.totalorder %s1019_s27, %s1019_s27 }
   0xc   :  { %p1026_p6 = por %p1025_p5, %p1024_p4 }
   0xe   :  { %p1027_p7 = pnand %p1026_p6, %p1020_p3 }
  0x10   :  { %1030 = shalt.err (!%p1027_p7)
}
  0x11   :  { %s1104_s28 = smov 64   ;;  %s1105_s29 = smov 4  }
  0x12   :  { %36 = dma.hbm_to_vmem [thread:$0]  %s1328_s1, 256, %s31_s19, [#allocation7], %s1104_s28, %s1104_s28, %s1105_s29  }
  0x13   :  { %s1106_s7 = smov [#allocation3]   ;;  %s1031_s11 = scalar_lea.hbm %s1327_s0, 256 }
  0x14   :  { %s18_s8 = sshll.u32 %s1106_s7, 4  ;;  %p1032_p8 = scmp.ne.s32.totalorder %s1327_s0, %s1031_s11  ;;  %s19_s8 = int_to_ptr.vmem [resolvable:$true] %s18_s8 }
  0x15   :  { %p1035_p9 = scmp.lt.u32.totalorder %s1031_s11, %s1327_s0 }
  0x17   :  { %p1037_p10 = pnand %p1035_p9, %p1032_p8 }
  0x19   :  { %1040 = shalt.err (!%p1037_p10)
}
  0x1a   :  { %s1041_s16 = scalar_lea.vmem %s19_s8, 256  ;;  %p1046_p12 = scmp.lt.s32.totalorder %s19_s8, %s19_s8 }
  0x1b   :  { %p1042_p11 = scmp.ne.s32.totalorder %s19_s8, %s1041_s16  ;;  %p1047_p13 = scmp.lt.s32.totalorder %s1041_s16, %s1041_s16 }
  0x1d   :  { %p1048_p0 = por %p1047_p13, %p1046_p12 }
  0x1f   :  { %p1049_p1 = pnand %p1048_p0, %p1042_p11 }
  0x21   :  { %1052 = shalt.err (!%p1049_p1)
}
  0x22   :  { %s1107_s1 = smov 32   ;;  %s1108_s17 = smov 2  }
  0x23   :  { %24 = dma.hbm_to_vmem [thread:$0]  %s1327_s0, 256, %s19_s8, [#allocation4], %s1107_s1, %s1107_s1, %s1108_s17  }
  0x24   :  { %s1109_s20 = smov [#allocation8]   ;;  %s1053_s24 = scalar_lea.hbm %s1330_s3, 256 }
  0x25   :  { %s44_s21 = sshll.u32 %s1109_s20, 4  ;;  %p1054_p2 = scmp.ne.s32.totalorder %s1330_s3, %s1053_s24  ;;  %s45_s21 = int_to_ptr.vmem [resolvable:$true] %s44_s21 }
  0x26   :  { %p1057_p3 = scmp.lt.u32.totalorder %s1053_s24, %s1330_s3 }
  0x28   :  { %p1059_p4 = pnand %p1057_p3, %p1054_p2 }
  0x2a   :  { %1062 = shalt.err (!%p1059_p4)
}
  0x2b   :  { %s1063_s6 = scalar_lea.vmem %s45_s21, 256  ;;  %p1068_p6 = scmp.lt.s32.totalorder %s45_s21, %s45_s21 }
  0x2c   :  { %p1064_p5 = scmp.ne.s32.totalorder %s45_s21, %s1063_s6  ;;  %p1069_p7 = scmp.lt.s32.totalorder %s1063_s6, %s1063_s6 }
  0x2e   :  { %p1070_p8 = por %p1069_p7, %p1068_p6 }
  0x30   :  { %p1071_p9 = pnand %p1070_p8, %p1064_p5 }
  0x32   :  { %1074 = shalt.err (!%p1071_p9)
}
  0x33   :  { %50 = dma.hbm_to_vmem [thread:$0]  %s1330_s3, 256, %s45_s21, [#allocation7], %s1104_s28, %s1104_s28, %s1105_s29  }
  0x34   :  { %1097 = dma.done.wait [#allocation4], 256  }
  0x35   :  { %1098 = vsyncadd [#allocation4], 4294967040 }
  0x36   :  { %1099 = dma.done.wait [#allocation7], 512  }
  0x37   :  { %1100 = vsyncadd [#allocation7], 4294966784  ;;  %vm67_vm0 = vcmask 254976   ;;  %v1110_v0 = vmov 0.0   ;;  %vm1111_vm1 = vmmov 0   ;;  %v1196_v1 = vld [vmem:[#allocation6] sm:$0xff]  }
  0x38   :  { %874 = vmatprep.subr.bf16.mxu0 %v1110_v0  ;;  %878 = vmatprep.mubr.msk.bf16.mxu0 %vm1111_vm1, %v1110_v0  ;;  %68 = vst.msk [vmem:[#allocation2] sm:$0x3] %vm67_vm0, %v1110_v0  ;;  %v1199_v2 = vld [vmem:[#allocation6 + $0x8] sm:$0xff]   ;;  %vm94_vm2 = vcmask 261120   ;;  %v80_v12 = vld [vmem:[#allocation3] sm:$0x3] }
  0x39   :  { %882 = vmatprep.subr.bf16.mxu1 %v1110_v0  ;;  %886 = vmatprep.mubr.msk.bf16.mxu1 %vm1111_vm1, %v1110_v0  ;;  %v824_v4 = vld [vmem:[%s1329_s2] ss:$0 sm:$0xff]  ;;  %v176_v36 = vld [vmem:[#allocation3 + $0x2] sm:$0x3]  ;;  %s1112_s2 = smov 96   ;;  %s1113_s10 = smov [#allocation9]  }
  0x3a   :  { %875 = vmatpush3.bf16.msra.mxu0 %v1196_v1  ;;  %883 = vmatpush3.bf16.msra.mxu1 %v1196_v1  ;;  %v255_v59 = vld [vmem:[#allocation3 + $0x4] sm:$0x3]  ;;  %s814_s11 = sshll.u32 %s1113_s10, 4  ;;  %s815_s11 = int_to_ptr.vmem [resolvable:$true] %s814_s11 }
  0x3b   :  { %876 = vmatprep.subr.bf16.mxu0 %v1110_v0  ;;  %145 = vrot.lane.b32.xlu0 %v824_v4, %s1104_s28  ;;  %p1080_p11 = scmp.lt.s32.totalorder %s815_s11, %s815_s11 }
  0x3c   :  { %884 = vmatprep.subr.bf16.mxu1 %v1110_v0 }
  0x3e   :  { %877 = vmatpush3.bf16.msra.mxu0 %v1199_v2  ;;  %885 = vmatpush3.bf16.msra.mxu1 %v1199_v2 }
  0x3f   :  { %v79_v3 = vld [vmem:[#allocation2] sm:$0x3]  ;;  %890 = vmatprep.subr.bf16.mxu0 %v1110_v0  ;;  %898 = vmatprep.subr.bf16.mxu1 %v1110_v0 }
  0x40   :  { %v81_v5 = vpack.c.bf16 %v79_v3, %v79_v3 }
  0x42   :  { %879 = vmatmul.mubr.msk.bf16.vlgmr.msra.gmra.mrb[0].mxu0 %vm94_vm2, %v81_v5 }
  0x43   :  { %891 = vmatpush3.bf16.msra.mxu0 %v1196_v1  ;;  %894 = vmatprep.mubr.msk.bf16.mxu0 %vm1111_vm1, %v1110_v0 }
  0x44   :  { %892 = vmatprep.subr.bf16.mxu0 %v1110_v0 }
  0x47   :  { %893 = vmatpush3.bf16.msra.mxu0 %v1199_v2 }
  0x48   :  { %906 = vmatprep.subr.bf16.mxu0 %v1110_v0 }
  0xad   :  { %v1219_v6 = vpop.permute.xlu0 %145 }
 0x115   :  { %v132_v7 = vpop.f32.mrb[0].mxu0 }
 0x116   :  { %v880_v8 = vpop.f32.mrb[1].mxu0  ;;  %v148_v9 = vadd.f32 %v1219_v6, %v132_v7  ;;  %v138_v13 = vadd.f32 %v132_v7, %v80_v12 }
 0x117   :  { %v135_v10 = vpop.f32.mrb[2].mxu0 }
 0x118   :  { %150 = vrot.lane.b32.xlu0 %v148_v9, %s1104_s28  ;;  %v881_v11 = vpop.f32.mrb[3].mxu0  ;;  %v828_v14 = vmul.f32 -1.442695, %v138_v13 }
 0x11a   :  { %961 = vpow2.f32 %v828_v14 }
 0x124   :  { %v962_v15 = vpop.eup %961 }
 0x125   :  { %v142_v16 = vadd.f32 1.0, %v962_v15 }
 0x127   :  { %963 = vrcp.f32 %v142_v16 }
 0x131   :  { %v964_v17 = vpop.eup %963 }
 0x18a   :  { %v151_v18 = vpop.permute.xlu0 %150 }
 0x18b   :  { %v153_v19 = vmul.f32 %v964_v17, %v151_v18 }
 0x18d   :  { %155 = vrot.lane.b32.xlu1 %v153_v19, %s1104_s28 }
 0x1ff   :  { %v156_v20 = vpop.permute.xlu1 %155 }
 0x200   :  { %v158_v21 = vadd.f32 %v156_v20, %v80_v12 }
 0x202   :  { %965 = vtanh.f32 %v158_v21 }
 0x20c   :  { %v966_v22 = vpop.eup %965 }
 0x20d   :  { %161 = vrot.lane.b32.xlu1 %v966_v22, %s1104_s28 }
 0x27f   :  { %v162_v23 = vpop.permute.xlu1 %161 }
 0x280   :  { %v164_v24 = vsub.f32 %v79_v3, %v162_v23 }
 0x282   :  { %166 = vrot.lane.b32.xlu0 %v164_v24, %s1107_s1 }
 0x2f4   :  { %v167_v25 = vpop.permute.xlu0 %166 }
 0x2f5   :  { %v169_v26 = vmul.f32 %v964_v17, %v167_v25 }
 0x2f7   :  { %171 = vrot.lane.b32.xlu1 %v169_v26, %s1107_s1 }
 0x369   :  { %v172_v27 = vpop.permute.xlu1 %171 }
 0x36a   :  { %v174_v28 = vadd.f32 %v966_v22, %v172_v27  ;;  %v334_v22 = vld [vmem:[#allocation3 + $0x6] sm:$0x3] }
 0x36c   :  { %v177_v29 = vpack.c.bf16 %v174_v28, %v174_v28 }
 0x36e   :  { %179 = vrot.lane.b32.xlu0 %v177_v29, %s1104_s28 }
 0x3e0   :  { %v180_v30 = vpop.permute.xlu0 %179 }
 0x3e1   :  { %887 = vmatmul.mubr.msk.bf16.vlgmr.msra.gmra.mrb[0].mxu1 %vm94_vm2, %v180_v30 }
 0x3e2   :  { %899 = vmatpush3.bf16.msra.mxu1 %v1196_v1  ;;  %902 = vmatprep.mubr.msk.bf16.mxu1 %vm1111_vm1, %v1110_v0 }
 0x3e3   :  { %900 = vmatprep.subr.bf16.mxu1 %v1110_v0 }
 0x3e6   :  { %901 = vmatpush3.bf16.msra.mxu1 %v1199_v2 }
 0x3e7   :  { %914 = vmatprep.subr.bf16.mxu1 %v1110_v0 }
 0x4b4   :  { %v218_v31 = vpop.f32.mrb[0].mxu1 }
 0x4b5   :  { %v888_v32 = vpop.f32.mrb[1].mxu1  ;;  %v231_v33 = vadd.f32 %v218_v31, %v1219_v6  ;;  %v224_v37 = vadd.f32 %v218_v31, %v176_v36 }
 0x4b6   :  { %v221_v34 = vpop.f32.mrb[2].mxu1 }
 0x4b7   :  { %233 = vrot.lane.b32.xlu1 %v231_v33, %s1104_s28  ;;  %v889_v35 = vpop.f32.mrb[3].mxu1  ;;  %v830_v38 = vmul.f32 -1.442695, %v224_v37 }
 0x4b9   :  { %967 = vpow2.f32 %v830_v38 }
 0x4c3   :  { %v968_v39 = vpop.eup %967 }
 0x4c4   :  { %v228_v40 = vadd.f32 1.0, %v968_v39 }
 0x4c6   :  { %969 = vrcp.f32 %v228_v40 }
 0x4d0   :  { %v970_v41 = vpop.eup %969 }
 0x529   :  { %v234_v42 = vpop.permute.xlu1 %233 }
 0x52a   :  { %v236_v43 = vmul.f32 %v970_v41, %v234_v42 }
 0x52c   :  { %238 = vrot.lane.b32.xlu0 %v236_v43, %s1104_s28 }
 0x59e   :  { %v239_v44 = vpop.permute.xlu0 %238 }
 0x59f   :  { %v241_v45 = vadd.f32 %v239_v44, %v176_v36 }
 0x5a1   :  { %971 = vtanh.f32 %v241_v45  ;;  %v413_v45 = vld [vmem:[#allocation3 + $0x8] sm:$0x3] }
 0x5ab   :  { %v972_v46 = vpop.eup %971 }
 0x5ac   :  { %v243_v47 = vsub.f32 %v174_v28, %v972_v46 }
 0x5ae   :  { %245 = vrot.lane.b32.xlu1 %v243_v47, %s1112_s2 }
 0x620   :  { %v246_v48 = vpop.permute.xlu1 %245 }
 0x621   :  { %v248_v49 = vmul.f32 %v970_v41, %v246_v48 }
 0x623   :  { %250 = vrot.lane.b32.xlu0 %v248_v49, %s1107_s1 }
 0x695   :  { %v251_v50 = vpop.permute.xlu0 %250 }
 0x696   :  { %v253_v51 = vadd.f32 %v972_v46, %v251_v50 }
 0x698   :  { %v256_v52 = vpack.c.bf16 %v253_v51, %v253_v51 }
 0x69a   :  { %258 = vrot.lane.b32.xlu1 %v256_v52, %s1104_s28 }
 0x70c   :  { %v259_v53 = vpop.permute.xlu1 %258 }
 0x70d   :  { %895 = vmatmul.mubr.msk.bf16.vlgmr.msra.gmra.mrb[4].mxu0 %vm94_vm2, %v259_v53 }
 0x70e   :  { %907 = vmatpush3.bf16.msra.mxu0 %v1196_v1  ;;  %910 = vmatprep.mubr.msk.bf16.mxu0 %vm1111_vm1, %v1110_v0 }
 0x70f   :  { %908 = vmatprep.subr.bf16.mxu0 %v1110_v0 }
 0x712   :  { %909 = vmatpush3.bf16.msra.mxu0 %v1199_v2 }
 0x713   :  { %922 = vmatprep.subr.bf16.mxu0 %v1110_v0 }
 0x7e0   :  { %v297_v54 = vpop.f32.mrb[4].mxu0 }
 0x7e1   :  { %v896_v55 = vpop.f32.mrb[5].mxu0  ;;  %v310_v56 = vadd.f32 %v297_v54, %v1219_v6  ;;  %v303_v60 = vadd.f32 %v297_v54, %v255_v59 }
 0x7e2   :  { %v300_v57 = vpop.f32.mrb[6].mxu0 }
 0x7e3   :  { %312 = vrot.lane.b32.xlu0 %v310_v56, %s1104_s28  ;;  %v897_v58 = vpop.f32.mrb[7].mxu0  ;;  %v832_v61 = vmul.f32 -1.442695, %v303_v60 }
 0x7e5   :  { %973 = vpow2.f32 %v832_v61 }
 0x7ef   :  { %v974_v62 = vpop.eup %973 }
 0x7f0   :  { %v307_v63 = vadd.f32 1.0, %v974_v62 }
 0x7f2   :  { %975 = vrcp.f32 %v307_v63 }
 0x7fc   :  { %v976_v3 = vpop.eup %975 }
 0x855   :  { %v313_v4 = vpop.permute.xlu0 %312 }
 0x856   :  { %v315_v5 = vmul.f32 %v976_v3, %v313_v4 }
 0x858   :  { %317 = vrot.lane.b32.xlu1 %v315_v5, %s1104_s28 }
 0x8ca   :  { %v318_v7 = vpop.permute.xlu1 %317 }
 0x8cb   :  { %v320_v8 = vadd.f32 %v318_v7, %v255_v59 }
 0x8cd   :  { %977 = vtanh.f32 %v320_v8  ;;  %v492_v8 = vld [vmem:[#allocation3 + $0xa] sm:$0x3] }
 0x8d7   :  { %v978_v9 = vpop.eup %977 }
 0x8d8   :  { %v322_v10 = vsub.f32 %v253_v51, %v978_v9 }
 0x8da   :  { %324 = vrot.lane.b32.xlu0 %v322_v10, %s1112_s2 }
 0x94c   :  { %v325_v11 = vpop.permute.xlu0 %324 }
 0x94d   :  { %v327_v12 = vmul.f32 %v976_v3, %v325_v11 }
 0x94f   :  { %329 = vrot.lane.b32.xlu1 %v327_v12, %s1107_s1 }
 0x9c1   :  { %v330_v13 = vpop.permute.xlu1 %329 }
 0x9c2   :  { %v332_v14 = vadd.f32 %v978_v9, %v330_v13 }
 0x9c4   :  { %v335_v15 = vpack.c.bf16 %v332_v14, %v332_v14 }
 0x9c6   :  { %337 = vrot.lane.b32.xlu0 %v335_v15, %s1104_s28 }
 0xa38   :  { %v338_v16 = vpop.permute.xlu0 %337 }
 0xa39   :  { %903 = vmatmul.mubr.msk.bf16.vlgmr.msra.gmra.mrb[4].mxu1 %vm94_vm2, %v338_v16 }
 0xa3a   :  { %915 = vmatpush3.bf16.msra.mxu1 %v1196_v1  ;;  %918 = vmatprep.mubr.msk.bf16.mxu1 %vm1111_vm1, %v1110_v0 }
 0xa3b   :  { %916 = vmatprep.subr.bf16.mxu1 %v1110_v0 }
 0xa3e   :  { %917 = vmatpush3.bf16.msra.mxu1 %v1199_v2 }
 0xa3f   :  { %930 = vmatprep.subr.bf16.mxu1 %v1110_v0 }
 0xb0c   :  { %v376_v17 = vpop.f32.mrb[4].mxu1 }
 0xb0d   :  { %v904_v18 = vpop.f32.mrb[5].mxu1  ;;  %v389_v19 = vadd.f32 %v376_v17, %v1219_v6  ;;  %v382_v23 = vadd.f32 %v376_v17, %v334_v22 }
 0xb0e   :  { %v379_v20 = vpop.f32.mrb[6].mxu1 }
 0xb0f   :  { %391 = vrot.lane.b32.xlu1 %v389_v19, %s1104_s28  ;;  %v905_v21 = vpop.f32.mrb[7].mxu1  ;;  %v834_v24 = vmul.f32 -1.442695, %v382_v23 }
 0xb11   :  { %979 = vpow2.f32 %v834_v24 }
 0xb1b   :  { %v980_v25 = vpop.eup %979 }
 0xb1c   :  { %v386_v26 = vadd.f32 1.0, %v980_v25 }
 0xb1e   :  { %981 = vrcp.f32 %v386_v26 }
 0xb28   :  { %v982_v27 = vpop.eup %981 }
 0xb81   :  { %v392_v28 = vpop.permute.xlu1 %391 }
 0xb82   :  { %v394_v29 = vmul.f32 %v982_v27, %v392_v28 }
 0xb84   :  { %396 = vrot.lane.b32.xlu0 %v394_v29, %s1104_s28  ;;  %v571_v29 = vld [vmem:[#allocation3 + $0xc] sm:$0x3] }
 0xbf6   :  { %v397_v30 = vpop.permute.xlu0 %396 }
 0xbf7   :  { %v399_v31 = vadd.f32 %v397_v30, %v334_v22 }
 0xbf9   :  { %983 = vtanh.f32 %v399_v31 }
 0xc03   :  { %v984_v32 = vpop.eup %983 }
 0xc04   :  { %v401_v33 = vsub.f32 %v332_v14, %v984_v32 }
 0xc06   :  { %403 = vrot.lane.b32.xlu1 %v401_v33, %s1112_s2 }
 0xc78   :  { %v404_v34 = vpop.permute.xlu1 %403 }
 0xc79   :  { %v406_v35 = vmul.f32 %v982_v27, %v404_v34 }
 0xc7b   :  { %408 = vrot.lane.b32.xlu0 %v406_v35, %s1107_s1 }
 0xced   :  { %v409_v36 = vpop.permute.xlu0 %408 }
 0xcee   :  { %v411_v37 = vadd.f32 %v984_v32, %v409_v36 }
 0xcf0   :  { %v414_v38 = vpack.c.bf16 %v411_v37, %v411_v37 }
 0xcf2   :  { %416 = vrot.lane.b32.xlu1 %v414_v38, %s1104_s28 }
 0xd64   :  { %v417_v39 = vpop.permute.xlu1 %416 }
 0xd65   :  { %911 = vmatmul.mubr.msk.bf16.vlgmr.msra.gmra.mrb[8].mxu0 %vm94_vm2, %v417_v39 }
 0xd66   :  { %923 = vmatpush3.bf16.msra.mxu0 %v1196_v1  ;;  %926 = vmatprep.mubr.msk.bf16.mxu0 %vm1111_vm1, %v1110_v0 }
 0xd67   :  { %924 = vmatprep.subr.bf16.mxu0 %v1110_v0 }
 0xd6a   :  { %925 = vmatpush3.bf16.msra.mxu0 %v1199_v2 }
 0xd6b   :  { %938 = vmatprep.subr.bf16.mxu0 %v1110_v0 }
 0xe38   :  { %v455_v40 = vpop.f32.mrb[8].mxu0 }
 0xe39   :  { %v912_v41 = vpop.f32.mrb[9].mxu0  ;;  %v468_v42 = vadd.f32 %v455_v40, %v1219_v6  ;;  %v461_v46 = vadd.f32 %v455_v40, %v413_v45 }
 0xe3a   :  { %v458_v43 = vpop.f32.mrb[10].mxu0 }
 0xe3b   :  { %470 = vrot.lane.b32.xlu0 %v468_v42, %s1104_s28  ;;  %v913_v44 = vpop.f32.mrb[11].mxu0  ;;  %v836_v47 = vmul.f32 -1.442695, %v461_v46 }
 0xe3d   :  { %985 = vpow2.f32 %v836_v47 }
 0xe47   :  { %v986_v48 = vpop.eup %985 }
 0xe48   :  { %v465_v49 = vadd.f32 1.0, %v986_v48 }
 0xe4a   :  { %987 = vrcp.f32 %v465_v49 }
 0xe54   :  { %v988_v50 = vpop.eup %987 }
 0xead   :  { %v471_v51 = vpop.permute.xlu0 %470 }
 0xeae   :  { %v473_v52 = vmul.f32 %v988_v50, %v471_v51 }
 0xeb0   :  { %475 = vrot.lane.b32.xlu1 %v473_v52, %s1104_s28  ;;  %v650_v52 = vld [vmem:[#allocation3 + $0xe] sm:$0x3] }
 0xf22   :  { %v476_v53 = vpop.permute.xlu1 %475 }
 0xf23   :  { %v478_v54 = vadd.f32 %v476_v53, %v413_v45 }
 0xf25   :  { %989 = vtanh.f32 %v478_v54 }
 0xf2f   :  { %v990_v55 = vpop.eup %989 }
 0xf30   :  { %v480_v56 = vsub.f32 %v411_v37, %v990_v55 }
 0xf32   :  { %482 = vrot.lane.b32.xlu0 %v480_v56, %s1112_s2 }
 0xfa4   :  { %v483_v57 = vpop.permute.xlu0 %482 }
 0xfa5   :  { %v485_v58 = vmul.f32 %v988_v50, %v483_v57 }
 0xfa7   :  { %487 = vrot.lane.b32.xlu1 %v485_v58, %s1107_s1 }
0x1019   :  { %v488_v59 = vpop.permute.xlu1 %487 }
0x101a   :  { %v490_v60 = vadd.f32 %v990_v55, %v488_v59 }
0x101c   :  { %v493_v61 = vpack.c.bf16 %v490_v60, %v490_v60 }
0x101e   :  { %495 = vrot.lane.b32.xlu0 %v493_v61, %s1104_s28 }
0x1090   :  { %v496_v62 = vpop.permute.xlu0 %495 }
0x1091   :  { %919 = vmatmul.mubr.msk.bf16.vlgmr.msra.gmra.mrb[8].mxu1 %vm94_vm2, %v496_v62 }
0x1092   :  { %931 = vmatpush3.bf16.msra.mxu1 %v1196_v1  ;;  %934 = vmatprep.mubr.msk.bf16.mxu1 %vm1111_vm1, %v1110_v0 }
0x1093   :  { %932 = vmatprep.subr.bf16.mxu1 %v1110_v0 }
0x1096   :  { %933 = vmatpush3.bf16.msra.mxu1 %v1199_v2 }
0x1164   :  { %v534_v63 = vpop.f32.mrb[8].mxu1 }
0x1165   :  { %v920_v3 = vpop.f32.mrb[9].mxu1  ;;  %v547_v4 = vadd.f32 %v534_v63, %v1219_v6  ;;  %v540_v9 = vadd.f32 %v534_v63, %v492_v8  ;;  %v959_v63 = vld [vmem:[#allocation8] sm:$0xff]  }
0x1166   :  { %v537_v5 = vpop.f32.mrb[10].mxu1  ;;  %v960_v3 = vld [vmem:[#allocation8 + $0x8] sm:$0xff]  }
0x1167   :  { %549 = vrot.lane.b32.xlu1 %v547_v4, %s1104_s28  ;;  %v921_v7 = vpop.f32.mrb[11].mxu1  ;;  %v838_v10 = vmul.f32 -1.442695, %v540_v9 }
0x1169   :  { %991 = vpow2.f32 %v838_v10 }
0x1173   :  { %v992_v1 = vpop.eup %991 }
0x1174   :  { %v544_v11 = vadd.f32 1.0, %v992_v1 }
0x1176   :  { %993 = vrcp.f32 %v544_v11 }
0x1180   :  { %v994_v12 = vpop.eup %993 }
0x11d9   :  { %v550_v13 = vpop.permute.xlu1 %549 }
0x11da   :  { %v552_v14 = vmul.f32 %v994_v12, %v550_v13 }
0x11dc   :  { %554 = vrot.lane.b32.xlu0 %v552_v14, %s1104_s28 }
0x124e   :  { %v555_v2 = vpop.permute.xlu0 %554 }
0x124f   :  { %v557_v15 = vadd.f32 %v555_v2, %v492_v8 }
0x1251   :  { %995 = vtanh.f32 %v557_v15 }
0x125b   :  { %v996_v16 = vpop.eup %995 }
0x125c   :  { %v559_v17 = vsub.f32 %v490_v60, %v996_v16 }
0x125e   :  { %561 = vrot.lane.b32.xlu1 %v559_v17, %s1112_s2 }
0x12d0   :  { %v562_v18 = vpop.permute.xlu1 %561 }
0x12d1   :  { %v564_v19 = vmul.f32 %v994_v12, %v562_v18 }
0x12d3   :  { %566 = vrot.lane.b32.xlu0 %v564_v19, %s1107_s1 }
0x1345   :  { %v567_v20 = vpop.permute.xlu0 %566 }
0x1346   :  { %v569_v21 = vadd.f32 %v996_v16, %v567_v20 }
0x1348   :  { %v572_v22 = vpack.c.bf16 %v569_v21, %v569_v21 }
0x134a   :  { %574 = vrot.lane.b32.xlu1 %v572_v22, %s1104_s28 }
0x13bc   :  { %v575_v23 = vpop.permute.xlu1 %574 }
0x13bd   :  { %927 = vmatmul.mubr.msk.bf16.vlgmr.msra.gmra.mrb[12].mxu0 %vm94_vm2, %v575_v23 }
0x13be   :  { %942 = vmatprep.mubr.msk.bf16.mxu0 %vm1111_vm1, %v1110_v0  ;;  %939 = vmatpush3.bf16.msra.mxu0 %v959_v63 }
0x13bf   :  { %940 = vmatprep.subr.bf16.mxu0 %v1110_v0  ;;  %v843_v0 = vld [vmem:[%s1331_s4] ss:$0 sm:$0xff] }
0x13c2   :  { %941 = vmatpush3.bf16.msra.mxu0 %v960_v3 }
0x1490   :  { %v613_v24 = vpop.f32.mrb[12].mxu0 }
0x1491   :  { %v928_v25 = vpop.f32.mrb[13].mxu0  ;;  %v626_v26 = vadd.f32 %v613_v24, %v1219_v6  ;;  %v619_v30 = vadd.f32 %v613_v24, %v571_v29 }
0x1492   :  { %v616_v27 = vpop.f32.mrb[14].mxu0 }
0x1493   :  { %628 = vrot.lane.b32.xlu0 %v626_v26, %s1104_s28  ;;  %v929_v28 = vpop.f32.mrb[15].mxu0  ;;  %v840_v31 = vmul.f32 -1.442695, %v619_v30 }
0x1495   :  { %997 = vpow2.f32 %v840_v31 }
0x149f   :  { %v998_v32 = vpop.eup %997 }
0x14a0   :  { %v623_v33 = vadd.f32 1.0, %v998_v32 }
0x14a2   :  { %999 = vrcp.f32 %v623_v33 }
0x14ac   :  { %v1000_v34 = vpop.eup %999 }
0x1505   :  { %v629_v35 = vpop.permute.xlu0 %628 }
0x1506   :  { %v631_v36 = vmul.f32 %v1000_v34, %v629_v35 }
0x1508   :  { %633 = vrot.lane.b32.xlu1 %v631_v36, %s1104_s28 }
0x157a   :  { %v634_v37 = vpop.permute.xlu1 %633 }
0x157b   :  { %v636_v38 = vadd.f32 %v634_v37, %v571_v29 }
0x157d   :  { %1001 = vtanh.f32 %v636_v38 }
0x1587   :  { %v1002_v39 = vpop.eup %1001 }
0x1588   :  { %v638_v40 = vsub.f32 %v569_v21, %v1002_v39 }
0x158a   :  { %640 = vrot.lane.b32.xlu0 %v638_v40, %s1112_s2 }
0x15fc   :  { %v641_v41 = vpop.permute.xlu0 %640 }
0x15fd   :  { %v643_v42 = vmul.f32 %v1000_v34, %v641_v41 }
0x15ff   :  { %645 = vrot.lane.b32.xlu1 %v643_v42, %s1107_s1 }
0x1671   :  { %v646_v43 = vpop.permute.xlu1 %645 }
0x1672   :  { %v648_v44 = vadd.f32 %v1002_v39, %v646_v43 }
0x1674   :  { %v651_v45 = vpack.c.bf16 %v648_v44, %v648_v44 }
0x1676   :  { %653 = vrot.lane.b32.xlu0 %v651_v45, %s1104_s28 }
0x16e8   :  { %v654_v46 = vpop.permute.xlu0 %653 }
0x16e9   :  { %935 = vmatmul.mubr.msk.bf16.vlgmr.msra.gmra.mrb[12].mxu1 %vm94_vm2, %v654_v46 }
0x17bc   :  { %v692_v47 = vpop.f32.mrb[12].mxu1 }
0x17bd   :  { %v936_v48 = vpop.f32.mrb[13].mxu1  ;;  %v705_v49 = vadd.f32 %v692_v47, %v1219_v6  ;;  %v698_v53 = vadd.f32 %v692_v47, %v650_v52 }
0x17be   :  { %v695_v50 = vpop.f32.mrb[14].mxu1 }
0x17bf   :  { %707 = vrot.lane.b32.xlu1 %v705_v49, %s1104_s28  ;;  %v937_v51 = vpop.f32.mrb[15].mxu1  ;;  %v842_v54 = vmul.f32 -1.442695, %v698_v53 }
0x17c1   :  { %1003 = vpow2.f32 %v842_v54 }
0x17cb   :  { %v1004_v55 = vpop.eup %1003 }
0x17cc   :  { %v702_v56 = vadd.f32 1.0, %v1004_v55 }
0x17ce   :  { %1005 = vrcp.f32 %v702_v56 }
0x17d8   :  { %v1006_v57 = vpop.eup %1005 }
0x1831   :  { %v708_v58 = vpop.permute.xlu1 %707 }
0x1832   :  { %v710_v59 = vmul.f32 %v1006_v57, %v708_v58 }
0x1834   :  { %712 = vrot.lane.b32.xlu0 %v710_v59, %s1104_s28 }
0x18a6   :  { %v713_v60 = vpop.permute.xlu0 %712 }
0x18a7   :  { %v715_v61 = vadd.f32 %v713_v60, %v650_v52 }
0x18a9   :  { %1007 = vtanh.f32 %v715_v61 }
0x18b3   :  { %v1008_v6 = vpop.eup %1007 }
0x18b4   :  { %v717_v62 = vsub.f32 %v648_v44, %v1008_v6 }
0x18b6   :  { %719 = vrot.lane.b32.xlu1 %v717_v62, %s1112_s2 }
0x1928   :  { %v720_v4 = vpop.permute.xlu1 %719 }
0x1929   :  { %v722_v5 = vmul.f32 %v1006_v57, %v720_v4 }
0x192b   :  { %724 = vrot.lane.b32.xlu0 %v722_v5, %s1107_s1 }
0x199d   :  { %v725_v7 = vpop.permute.xlu0 %724 }
0x199e   :  { %v727_v8 = vadd.f32 %v1008_v6, %v725_v7 }
0x19a0   :  { %729 = vrot.lane.b32.xlu0 %v727_v8, %s1104_s28  ;;  %v737_v9 = vpack.c.bf16 %v727_v8, %v727_v8 }
0x19a2   :  { %750 = vrot.lane.b32.xlu1 %v737_v9, %s1104_s28  ;;  %s1075_s28 = scalar_lea.vmem %s815_s11, 32 }
0x19a3   :  { %p1076_p10 = scmp.ne.s32.totalorder %s815_s11, %s1075_s28  ;;  %p1081_p12 = scmp.lt.s32.totalorder %s1075_s28, %s1075_s28 }
0x19a5   :  { %p1082_p13 = por %p1081_p12, %p1080_p11 }
0x19a7   :  { %p1083_p0 = pnand %p1082_p13, %p1076_p10 }
0x1a12   :  { %v730_v10 = vpop.permute.xlu0 %729 }
0x1a13   :  { %733 = vst.msk [vmem:[#allocation2] sm:$0x3] %vm67_vm0, %v730_v10 }
0x1a14   :  { %v751_v1 = vpop.permute.xlu1 %750 }
0x1a15   :  { %943 = vmatmul.mubr.msk.bf16.vlgmr.msra.gmra.mrb[16].mxu0 %vm94_vm2, %v751_v1 }
0x1ae8   :  { %v801_v11 = vpop.f32.mrb[16].mxu0 }
0x1ae9   :  { %v802_v12 = vadd.f32 %v843_v0, %v801_v11  ;;  %v944_v13 = vpop.f32.mrb[17].mxu0 }
0x1aea   :  { %v804_v14 = vpop.f32.mrb[18].mxu0 }
0x1aeb   :  { %807 = vst [vmem:[#allocation9] sm:$0x3] %v802_v12  ;;  %v945_v2 = vpop.f32.mrb[19].mxu0 }
0x1aec   :  { %1086 = shalt.err (!%p1083_p0)
}
0x1aed   :  { %s1087_s4 = scalar_lea.hbm %s1332_s5, 32 }
0x1aee   :  { %p1088_p1 = scmp.ne.s32.totalorder %s1332_s5, %s1087_s4  ;;  %p1091_p2 = scmp.lt.u32.totalorder %s1087_s4, %s1332_s5 }
0x1af0   :  { %p1093_p3 = pnand %p1091_p2, %p1088_p1 }
0x1af2   :  { %1096 = shalt.err (!%p1093_p3)
}
0x1af3   :  { %817 = dma.vmem_to_hbm [thread:$0]  %s815_s11, 32, %s1332_s5, [#allocation5]  }
0x1af4   :  { %1101 = dma.done.wait [#allocation5], 32  }
0x1af5   :  { %1102 = vsyncadd [#allocation5], 4294967264 }
0x1af6   :  { %821 = vsyncpa [#allocation4], 1 }
0x1af7   :  { %822 = vsyncpa [#allocation7], 1 }
0x1af8   :  { %823 = vsyncpa [#allocation5], 1 }

</bundles_post_ra>
